<compile_context>
chip_gen: v5e
topology: v5e:2x2
jax: 0.10.0
libtpu: 0.0.40
codegen_flags: <defaults>
</compile_context>

<pallas_src>
import functools
from typing import NamedTuple

import jax
import jax.numpy as jnp
from jax.experimental import pallas as pl
from jax.experimental.pallas import tpu as pltpu


def _round_up(n, m):
    return ((n + m - 1) // m) * m


# ---------------------------------------------------------------------------
# Kernel
# ---------------------------------------------------------------------------
def encoder2_kernel(x_ref, w1_ref, b1_ref, w2_ref, b2_ref, w3_ref, b3_ref,
                    mu_ref, std_ref, *, mp):
    """Fused enc1->relu->enc2->relu->enc3 -> (mu, std) on one batch tile.

    enc3's weight/bias have the 0.5 (of exp(log_var/2)) folded into the
    log_var half, and each half is zero-padded to `mp` (multiple of 128)
    columns, so the mu/std split below is a lane-tile-aligned static slice and
    exp (EUP) runs only on the std half.
    """
    # x arrives f32; cast to bf16 in-kernel (avoids an extra wrapper-side
    # HBM read+write pass over x).
    xb = x_ref[...].astype(jnp.bfloat16)

    # enc1 + ReLU (MXU bf16 matmul, f32 accumulate, f32 bias add)
    h1 = jnp.dot(xb, w1_ref[...], preferred_element_type=jnp.float32) + b1_ref[...]
    h1 = jnp.maximum(h1, 0.0).astype(jnp.bfloat16)              # (tb, 2H)

    # enc2 + ReLU
    h2 = jnp.dot(h1, w2_ref[...], preferred_element_type=jnp.float32) + b2_ref[...]
    h2 = jnp.maximum(h2, 0.0).astype(jnp.bfloat16)              # (tb, H)

    # enc3 (0.5 already folded into the log_var columns of w3/b3)
    h3 = jnp.dot(h2, w3_ref[...], preferred_element_type=jnp.float32) + b3_ref[...]  # (tb, 2*mp)

    mu_ref[...] = h3[:, :mp].astype(mu_ref.dtype)               # mu half
    std_ref[...] = jnp.exp(h3[:, mp:]).astype(std_ref.dtype)    # std = exp(0.5*log_var)


# ---------------------------------------------------------------------------
# One-time parameter preparation (hoisted out of the per-call forward path)
# ---------------------------------------------------------------------------
class Encoder2Prepped(NamedTuple):
    w1: jax.Array   # (D, 2H)  bf16
    b1: jax.Array   # (1, 2H)  f32
    w2: jax.Array   # (2H, H)  bf16
    b2: jax.Array   # (1, H)   f32
    w3: jax.Array   # (H, 2*Mp) bf16 -- 0.5 folded into log_var half, halves padded to Mp
    b3: jax.Array   # (1, 2*Mp) f32
    M: int
    Mp: int


def prepare_encoder2_params(params):
    """Fold the 0.5, pad each enc3 half to a 128-lane multiple, cast weights to bf16."""
    w1, b1, w2, b2, w3, b3 = params
    M = w3.shape[1] // 2
    Mp = _round_up(max(M, 1), 128)
    pad = Mp - M

    w3_mu, w3_lv = w3[:, :M], w3[:, M:] * 0.5
    b3_mu, b3_lv = b3[:, :M], b3[:, M:] * 0.5
    if pad:
        w3_mu = jnp.pad(w3_mu, ((0, 0), (0, pad)))
        w3_lv = jnp.pad(w3_lv, ((0, 0), (0, pad)))
        b3_mu = jnp.pad(b3_mu, ((0, 0), (0, pad)))
        b3_lv = jnp.pad(b3_lv, ((0, 0), (0, pad)))
    w3p = jnp.concatenate([w3_mu, w3_lv], axis=1).astype(jnp.bfloat16)
    b3p = jnp.concatenate([b3_mu, b3_lv], axis=1).astype(jnp.float32)

    return Encoder2Prepped(
        w1=w1.astype(jnp.bfloat16), b1=b1.astype(jnp.float32),
        w2=w2.astype(jnp.bfloat16), b2=b2.astype(jnp.float32),
        w3=w3p, b3=b3p, M=M, Mp=Mp)


# ---------------------------------------------------------------------------
# Hardware-aware tiling / VMEM budget
# ---------------------------------------------------------------------------
def _num_tensorcores():
    """2 on v7x (megacore sharding helps), 1 on v5e/v6e."""
    try:  # benign config query; fall back to the single-TC assumption
        kind = jax.devices()[0].device_kind.lower()
    except Exception:
        return 1
    return 2 if ("v7" in kind or "7x" in kind) else 1


def _vmem_capacity_bytes():
    try:  # benign config query; fall back to the smallest (v7x per-TC) VMEM
        return int(pltpu.get_tpu_info().vmem_capacity_bytes)
    except Exception:
        return 64 * 1024 * 1024


def _pick_tb(B, num_cores):
    """Batch tile size.

    Single-TC chips (v5e/v6e): one large tile (up to 1024 rows) -- nothing to
    shard across cores and the weights are resident, so extra grid steps are
    pure ~600-cycle overhead.  Two-TC chips (v7x): aim for >= 2 steps per core
    so the x-load / output-store DMAs pipeline behind the next step's compute.
    Prefer multiples of 256 (MXU rows on v6e/v7x), then 128, then 16 (bf16
    sublane packing).
    """
    if num_cores <= 1:
        if B <= 1024:
            return B
        cap = 512
    else:
        if B < 64:
            return B
        cap = max(min(512, B // (2 * num_cores)), 8)
    for mult in (256, 128, 16, 8):
        start = (cap // mult) * mult
        for cand in range(start, 0, -mult):
            if B % cand == 0:
                return cand
    return B


def _vmem_limit_bytes(tb, D, H2, H, Mp):
    """Rough upper bound on VMEM use with margin, clamped to ~75% of physical VMEM."""
    lanes = lambda n: _round_up(n, 128)
    est = (
        2 * tb * lanes(D) * 4                                       # x tile (f32), double-buffered
        + 2 * 2 * tb * Mp * 4                                       # mu/std tiles (f32), double-buffered
        + 2 * (D * lanes(H2) + H2 * lanes(H) + H * 2 * Mp) * 2      # bf16 weights (2 bufs)
        + 2 * 8 * (lanes(H2) + lanes(H) + 2 * Mp) * 4               # biases (sublane-padded)
        + 2 * tb * (lanes(H2) + lanes(H) + 2 * Mp) * 4              # live activation slack
    )
    cap = _vmem_capacity_bytes()
    limit = max(2 * est + (4 << 20), 32 << 20)
    limit = min(limit, int(0.75 * cap))   # never exceed physical VMEM (v7x: 64 MiB/TC)
    return int(limit)


# ---------------------------------------------------------------------------
# Forward
# ---------------------------------------------------------------------------
def encoder2_forward(x, prepped: Encoder2Prepped, *, tb=None):
    """Runs Encoder2 forward. x: (B, D) float32. Returns (mu, std), each (B, M)."""
    B, D = x.shape
    H2 = prepped.w1.shape[1]
    H = prepped.w2.shape[1]
    M, Mp = prepped.M, prepped.Mp

    num_cores = _num_tensorcores()
    if tb is None:
        tb = _pick_tb(B, num_cores)
    assert B % tb == 0, f"batch {B} must be divisible by tile {tb}"
    grid = (B // tb,)

    kernel = functools.partial(encoder2_kernel, mp=Mp)

    def wspec(shape):
        # Parameters never change across the batch grid; Pallas skips the
        # re-DMA when the block index repeats.
        return pl.BlockSpec(shape, lambda i: (0, 0))

    mu_p, std_p = pl.pallas_call(
        kernel,
        out_shape=(jax.ShapeDtypeStruct((B, Mp), jnp.float32),
                   jax.ShapeDtypeStruct((B, Mp), jnp.float32)),
        grid_spec=pltpu.PrefetchScalarGridSpec(
            num_scalar_prefetch=0,
            grid=grid,
            in_specs=[
                pl.BlockSpec((tb, D), lambda i: (i, 0)),   # x tile over batch (f32)
                wspec((D, H2)),                            # w1 (bf16)
                wspec((1, H2)),                            # b1 (f32)
                wspec((H2, H)),                            # w2 (bf16)
                wspec((1, H)),                             # b2 (f32)
                wspec((H, 2 * Mp)),                        # w3 (bf16, scaled + padded)
                wspec((1, 2 * Mp)),                        # b3 (f32, scaled + padded)
            ],
            out_specs=[pl.BlockSpec((tb, Mp), lambda i: (i, 0)),   # mu
                       pl.BlockSpec((tb, Mp), lambda i: (i, 0))],  # std
        ),
        compiler_params=pltpu.CompilerParams(
            dimension_semantics=("parallel",),
            vmem_limit_bytes=_vmem_limit_bytes(tb, D, H2, H, Mp),
        ),
    )(x, prepped.w1, prepped.b1, prepped.w2, prepped.b2, prepped.w3, prepped.b3)

    if Mp == M:          # realistic latent widths (M % 128 == 0): no slicing at all
        return mu_p, std_p
    return mu_p[:, :M], std_p[:, :M]


# ---------------------------------------------------------------------------
# Init (matches nn.Linear default: uniform(-1/sqrt(fan_in), 1/sqrt(fan_in)))
# ---------------------------------------------------------------------------
def init_encoder2_params(key, D, H, M):
    def linear(key, fan_in, fan_out):
        kw, kb = jax.random.split(key)
        bound = 1.0 / jnp.sqrt(fan_in)
        w = jax.random.uniform(kw, (fan_in, fan_out), jnp.float32, -bound, bound)
        b = jax.random.uniform(kb, (1, fan_out), jnp.float32, -bound, bound)
        return w, b

    k1, k2, k3 = jax.random.split(key, 3)
    w1, b1 = linear(k1, D, 2 * H)
    w2, b2 = linear(k2, 2 * H, H)
    w3, b3 = linear(k3, H, 2 * M)
    return (w1, b1, w2, b2, w3, b3)


if __name__ == "__main__":
    # Small shapes consistent with Encoder2(D, H, M).
    B, D, H, M = 256, 32, 32, 16

    key = jax.random.PRNGKey(0)
    kx, kp = jax.random.split(key)
    x = jax.random.normal(kx, (B, D), jnp.float32)
    params = init_encoder2_params(kp, D, H, M)

    # One-time parameter prep (fold 0.5, pad, bf16) -- cached by the caller.
    prepped = prepare_encoder2_params(params)

    mu, std = encoder2_forward(x, prepped)
    jax.block_until_ready((mu, std))

    # Pure-JAX f32 reference of the original PyTorch math.
    w1, b1, w2, b2, w3, b3 = params
    h = jnp.maximum(x @ w1 + b1, 0.0)
    h = jnp.maximum(h @ w2 + b2, 0.0)
    h = (h @ w3 + b3).reshape(-1, 2, M)
    mu_ref, std_ref = h[:, 0, :], jnp.exp(h[:, 1, :] / 2)

    assert mu.shape == (B, M) and std.shape == (B, M)
    # Kernel feeds the MXU bf16 (f32 accumulate), so allow bf16-level tolerance.
    assert jnp.allclose(mu, mu_ref, rtol=1e-1, atol=5e-2), "mu mismatch"
    assert jnp.allclose(std, std_ref, rtol=1e-1, atol=5e-2), "std mismatch"

    print("KERNEL_OK")
</pallas_src>

<mosaic_0001>
module attributes {stable_mosaic.version = 11 : i64} {
  func.func @encoder2_kernel(%arg0: i32, %arg1: memref<256x32xf32, #tpu.memory_space<vmem>>, %arg2: memref<32x64xbf16, #tpu.memory_space<vmem>>, %arg3: memref<1x64xf32, #tpu.memory_space<vmem>>, %arg4: memref<64x32xbf16, #tpu.memory_space<vmem>>, %arg5: memref<1x32xf32, #tpu.memory_space<vmem>>, %arg6: memref<32x256xbf16, #tpu.memory_space<vmem>>, %arg7: memref<1x256xf32, #tpu.memory_space<vmem>>, %arg8: memref<256x128xf32, #tpu.memory_space<vmem>>, %arg9: memref<256x128xf32, #tpu.memory_space<vmem>>) attributes {dimension_semantics = [#tpu.dimension_semantics<parallel>], iteration_bounds = array<i64: 1>, scalar_prefetch = 0 : i64, scratch_operands = 0 : i64, tpu.core_type = #tpu.core_type<tc>, window_params = [{transform_indices = @transform_0, window_bounds = array<i64: 256, 32>}, {pipeline_mode = #tpu.pipeline_mode<synchronous>, transform_indices = @transform_1, window_bounds = array<i64: 32, 64>}, {pipeline_mode = #tpu.pipeline_mode<synchronous>, transform_indices = @transform_2, window_bounds = array<i64: 1, 64>}, {pipeline_mode = #tpu.pipeline_mode<synchronous>, transform_indices = @transform_3, window_bounds = array<i64: 64, 32>}, {pipeline_mode = #tpu.pipeline_mode<synchronous>, transform_indices = @transform_4, window_bounds = array<i64: 1, 32>}, {pipeline_mode = #tpu.pipeline_mode<synchronous>, transform_indices = @transform_5, window_bounds = array<i64: 32, 256>}, {pipeline_mode = #tpu.pipeline_mode<synchronous>, transform_indices = @transform_6, window_bounds = array<i64: 1, 256>}, {transform_indices = @transform_7, window_bounds = array<i64: 256, 128>}, {transform_indices = @transform_8, window_bounds = array<i64: 256, 128>}]} {
    %c0 = arith.constant 0 : index
    %c0_0 = arith.constant 0 : index
    %0 = vector.load %arg1[%c0, %c0_0] : memref<256x32xf32, #tpu.memory_space<vmem>>, vector<256x32xf32>
    %1 = arith.truncf %0 : vector<256x32xf32> to vector<256x32xbf16>
    %c0_1 = arith.constant 0 : index
    %c0_2 = arith.constant 0 : index
    %2 = vector.load %arg2[%c0_1, %c0_2] : memref<32x64xbf16, #tpu.memory_space<vmem>>, vector<32x64xbf16>
    %cst = arith.constant dense<0.000000e+00> : vector<256x64xf32>
    %3 = tpu.matmul %1, %2, %cst {dimension_numbers = #tpu.dot_dimension_numbers<[1], [0], [0], [1], [0, 0, 1, 1], [], []>} : vector<256x32xbf16>, vector<32x64xbf16>, vector<256x64xf32> -> vector<256x64xf32>
    %c0_3 = arith.constant 0 : index
    %c0_4 = arith.constant 0 : index
    %4 = vector.load %arg3[%c0_3, %c0_4] : memref<1x64xf32, #tpu.memory_space<vmem>>, vector<1x64xf32>
    %5 = vector.broadcast %4 : vector<1x64xf32> to vector<256x64xf32>
    %6 = arith.addf %3, %5 : vector<256x64xf32>
    %cst_5 = arith.constant 0.000000e+00 : f32
    %7 = vector.broadcast %cst_5 : f32 to vector<256x64xf32>
    %8 = arith.maximumf %6, %7 : vector<256x64xf32>
    %9 = arith.truncf %8 : vector<256x64xf32> to vector<256x64xbf16>
    %c0_6 = arith.constant 0 : index
    %c0_7 = arith.constant 0 : index
    %10 = vector.load %arg4[%c0_6, %c0_7] : memref<64x32xbf16, #tpu.memory_space<vmem>>, vector<64x32xbf16>
    %cst_8 = arith.constant dense<0.000000e+00> : vector<256x32xf32>
    %11 = tpu.matmul %9, %10, %cst_8 {dimension_numbers = #tpu.dot_dimension_numbers<[1], [0], [0], [1], [0, 0, 1, 1], [], []>} : vector<256x64xbf16>, vector<64x32xbf16>, vector<256x32xf32> -> vector<256x32xf32>
    %c0_9 = arith.constant 0 : index
    %c0_10 = arith.constant 0 : index
    %12 = vector.load %arg5[%c0_9, %c0_10] : memref<1x32xf32, #tpu.memory_space<vmem>>, vector<1x32xf32>
    %13 = vector.broadcast %12 : vector<1x32xf32> to vector<256x32xf32>
    %14 = arith.addf %11, %13 : vector<256x32xf32>
    %cst_11 = arith.constant 0.000000e+00 : f32
    %15 = vector.broadcast %cst_11 : f32 to vector<256x32xf32>
    %16 = arith.maximumf %14, %15 : vector<256x32xf32>
    %17 = arith.truncf %16 : vector<256x32xf32> to vector<256x32xbf16>
    %c0_12 = arith.constant 0 : index
    %c0_13 = arith.constant 0 : index
    %18 = vector.load %arg6[%c0_12, %c0_13] : memref<32x256xbf16, #tpu.memory_space<vmem>>, vector<32x256xbf16>
    %cst_14 = arith.constant dense<0.000000e+00> : vector<256x256xf32>
    %19 = tpu.matmul %17, %18, %cst_14 {dimension_numbers = #tpu.dot_dimension_numbers<[1], [0], [0], [1], [0, 0, 1, 1], [], []>} : vector<256x32xbf16>, vector<32x256xbf16>, vector<256x256xf32> -> vector<256x256xf32>
    %c0_15 = arith.constant 0 : index
    %c0_16 = arith.constant 0 : index
    %20 = vector.load %arg7[%c0_15, %c0_16] : memref<1x256xf32, #tpu.memory_space<vmem>>, vector<1x256xf32>
    %21 = vector.broadcast %20 : vector<1x256xf32> to vector<256x256xf32>
    %22 = arith.addf %19, %21 : vector<256x256xf32>
    %23 = vector.extract_strided_slice %22 {offsets = [0, 0], sizes = [256, 128], strides = [1, 1]} : vector<256x256xf32> to vector<256x128xf32>
    %c0_17 = arith.constant 0 : index
    %c0_18 = arith.constant 0 : index
    %24 = vector.load %arg8[%c0_17, %c0_18] : memref<256x128xf32, #tpu.memory_space<vmem>>, vector<256x128xf32>
    tpu.vector_store %arg8[%c0_17, %c0_18], %23 {strides = array<i32>} : memref<256x128xf32, #tpu.memory_space<vmem>>, vector<256x128xf32>,
    %25 = vector.extract_strided_slice %22 {offsets = [0, 128], sizes = [256, 128], strides = [1, 1]} : vector<256x256xf32> to vector<256x128xf32>
    %26 = math.exp %25 : vector<256x128xf32>
    %c0_19 = arith.constant 0 : index
    %c0_20 = arith.constant 0 : index
    %27 = vector.load %arg9[%c0_19, %c0_20] : memref<256x128xf32, #tpu.memory_space<vmem>>, vector<256x128xf32>
    tpu.vector_store %arg9[%c0_19, %c0_20], %26 {strides = array<i32>} : memref<256x128xf32, #tpu.memory_space<vmem>>, vector<256x128xf32>,
    return
  }
  func.func @transform_0(%arg0: i32) -> (i32, i32) {
    %c0_i32 = arith.constant 0 : i32
    %c0_i32_0 = arith.constant 0 : i32
    return %arg0, %c0_i32 : i32, i32
  }
  func.func @transform_1(%arg0: i32) -> (i32, i32) {
    %c0_i32 = arith.constant 0 : i32
    %c0_i32_0 = arith.constant 0 : i32
    %c0_i32_1 = arith.constant 0 : i32
    return %c0_i32, %c0_i32_0 : i32, i32
  }
  func.func @transform_2(%arg0: i32) -> (i32, i32) {
    %c0_i32 = arith.constant 0 : i32
    %c0_i32_0 = arith.constant 0 : i32
    %c0_i32_1 = arith.constant 0 : i32
    return %c0_i32, %c0_i32_0 : i32, i32
  }
  func.func @transform_3(%arg0: i32) -> (i32, i32) {
    %c0_i32 = arith.constant 0 : i32
    %c0_i32_0 = arith.constant 0 : i32
    %c0_i32_1 = arith.constant 0 : i32
    return %c0_i32, %c0_i32_0 : i32, i32
  }
  func.func @transform_4(%arg0: i32) -> (i32, i32) {
    %c0_i32 = arith.constant 0 : i32
    %c0_i32_0 = arith.constant 0 : i32
    %c0_i32_1 = arith.constant 0 : i32
    return %c0_i32, %c0_i32_0 : i32, i32
  }
  func.func @transform_5(%arg0: i32) -> (i32, i32) {
    %c0_i32 = arith.constant 0 : i32
    %c0_i32_0 = arith.constant 0 : i32
    %c0_i32_1 = arith.constant 0 : i32
    return %c0_i32, %c0_i32_0 : i32, i32
  }
  func.func @transform_6(%arg0: i32) -> (i32, i32) {
    %c0_i32 = arith.constant 0 : i32
    %c0_i32_0 = arith.constant 0 : i32
    %c0_i32_1 = arith.constant 0 : i32
    return %c0_i32, %c0_i32_0 : i32, i32
  }
  func.func @transform_7(%arg0: i32) -> (i32, i32) {
    %c0_i32 = arith.constant 0 : i32
    %c0_i32_0 = arith.constant 0 : i32
    return %arg0, %c0_i32 : i32, i32
  }
  func.func @transform_8(%arg0: i32) -> (i32, i32) {
    %c0_i32 = arith.constant 0 : i32
    %c0_i32_0 = arith.constant 0 : i32
    return %arg0, %c0_i32 : i32, i32
  }
}

</mosaic_0001>

<bundles_post_ra>
// kernel: tpu_custom_call.1
= control target key start
LH: loop header
LB: loop body
LE: loop exit
PB: predicated region body
PF: predicated region fallthrough
CT: control target
= control target key end

     0   :  { %14 = vsyncpa [#allocation3], 0  ;;  %s1565_s0 = inlined_call_operand.vmem [shape: f32[256,32], index: 0, kind: input, shape index: {}]   ;;  %s1566_s1 = inlined_call_operand.vmem [shape: bf16[32,64], index: 1, kind: input, shape index: {}]   ;;  %s1567_s2 = inlined_call_operand.vmem [shape: f32[1,64], index: 2, kind: input, shape index: {}]   ;;  %s1568_s3 = inlined_call_operand.vmem [shape: bf16[64,32], index: 3, kind: input, shape index: {}]   ;;  %s1569_s4 = inlined_call_operand.vmem [shape: f32[1,32], index: 4, kind: input, shape index: {}]   ;;  %s1570_s5 = inlined_call_operand.vmem [shape: bf16[32,256], index: 5, kind: input, shape index: {}]   ;;  %s1571_s6 = inlined_call_operand.vmem [shape: f32[1,256], index: 6, kind: input, shape index: {}]   ;;  %s1572_s7 = inlined_call_operand.hbm [shape: f32[256,128], index: 7, kind: output, shape index: {0}]   ;;  %s1573_s8 = inlined_call_operand.hbm [shape: f32[256,128], index: 8, kind: output, shape index: {1}]  }
   0x1   :  { %v1032_v0 = vld [vmem:[%s1566_s1 + $0x8] sm:$0xff]  ;;  %v1031_v1 = vld [vmem:[%s1566_s1] sm:$0xff] }
   0x2   :  { %154 = vmatpush.bf16.msra.mxu0 %v1032_v0  ;;  %v31_v2 = vld [vmem:[%s1565_s0] sm:$0xff]  ;;  %v32_v3 = vld [vmem:[%s1565_s0 + $0x8] sm:$0xff] }
   0x3   :  { %15 = vsyncpa [#allocation5], 0  ;;  %v63_v4 = vpack.c.bf16 %v32_v3, %v31_v2  ;;  %vm99_vm0 = vcmask 261120   ;;  %v33_v5 = vld [vmem:[%s1565_s0 + $0x10] sm:$0xff]  ;;  %v34_v6 = vld [vmem:[%s1565_s0 + $0x18] sm:$0xff]  ;;  %vm321_vm1 = vcmask 523264  }
   0x4   :  { %v64_v7 = vpack.c.bf16 %v34_v6, %v33_v5  ;;  %v35_v8 = vld [vmem:[%s1565_s0 + $0x20] sm:$0xff]  ;;  %v36_v9 = vld [vmem:[%s1565_s0 + $0x28] sm:$0xff]  ;;  %v37_v11 = vld [vmem:[%s1565_s0 + $0x30] sm:$0xff]  ;;  %s1164_s29 = smov 128   ;;  %s1165_s30 = smov 8  }
   0x5   :  { %v65_v10 = vpack.c.bf16 %v36_v9, %v35_v8  ;;  %v38_v12 = vld [vmem:[%s1565_s0 + $0x38] sm:$0xff]  ;;  %v39_v14 = vld [vmem:[%s1565_s0 + $0x40] sm:$0xff]  ;;  %v40_v15 = vld [vmem:[%s1565_s0 + $0x48] sm:$0xff]  ;;  %s1166_s9 = smov [#allocation4]  }
   0x6   :  { %155 = vmatpush.bf16.msra.mxu0 %v1031_v1  ;;  %v66_v13 = vpack.c.bf16 %v38_v12, %v37_v11  ;;  %v67_v16 = vpack.c.bf16 %v40_v15, %v39_v14  ;;  %v41_v17 = vld [vmem:[%s1565_s0 + $0x50] sm:$0xff]  ;;  %v42_v18 = vld [vmem:[%s1565_s0 + $0x58] sm:$0xff]  ;;  %v43_v20 = vld [vmem:[%s1565_s0 + $0x60] sm:$0xff]  ;;  %s908_s10 = sshll.u32 %s1166_s9, 4  ;;  %s909_s10 = int_to_ptr.vmem [resolvable:$true] %s908_s10 }
   0x7   :  { %v68_v19 = vpack.c.bf16 %v42_v18, %v41_v17  ;;  %v44_v21 = vld [vmem:[%s1565_s0 + $0x68] sm:$0xff]  ;;  %v1036_v22 = vld [vmem:[%s1568_s3 + $0x18] sm:$0xff]  ;;  %v1035_v24 = vld [vmem:[%s1568_s3 + $0x10] sm:$0xff] }
   0x8   :  { %v69_v23 = vpack.c.bf16 %v44_v21, %v43_v20  ;;  %374 = vmatpush.bf16.msra.mxu1 %v1036_v22  ;;  %v1034_v25 = vld [vmem:[%s1568_s3 + $0x8] sm:$0xff]  ;;  %v1033_v26 = vld [vmem:[%s1568_s3] sm:$0xff]  ;;  %v45_v27 = vld [vmem:[%s1565_s0 + $0x70] sm:$0xff]  ;;  %s897_s3 = sshll.u32 %s1572_s7, 4  ;;  %s898_s3 = int_to_ptr.hbm [resolvable:$true] %s897_s3 }
   0x9   :  { %935 = vmatmul.msk.bf16.vlgmr.msra.gmra.mxu0 %vm99_vm0, %v63_v4  ;;  %v46_v28 = vld [vmem:[%s1565_s0 + $0x78] sm:$0xff]  ;;  %v47_v30 = vld [vmem:[%s1565_s0 + $0x80] sm:$0xff]  ;;  %v48_v31 = vld [vmem:[%s1565_s0 + $0x88] sm:$0xff] }
   0xa   :  { %v70_v29 = vpack.c.bf16 %v46_v28, %v45_v27  ;;  %v71_v32 = vpack.c.bf16 %v48_v31, %v47_v30  ;;  %v1295_v34 = vld [vmem:[%s1567_s2] ss:$0 sm:$0xff]  ;;  %v49_v40 = vld [vmem:[%s1565_s0 + $0x90] sm:$0xff]  ;;  %v50_v41 = vld [vmem:[%s1565_s0 + $0x98] sm:$0xff]  ;;  %s910_s2 = sshll.u32 %s1573_s8, 4  ;;  %s911_s2 = int_to_ptr.hbm [resolvable:$true] %s910_s2 }
   0xb   :  { %v72_v43 = vpack.c.bf16 %v50_v41, %v49_v40  ;;  %v51_v50 = vld [vmem:[%s1565_s0 + $0xa0] sm:$0xff]  ;;  %v52_v51 = vld [vmem:[%s1565_s0 + $0xa8] sm:$0xff]  ;;  %v53_v60 = vld [vmem:[%s1565_s0 + $0xb0] sm:$0xff] }
   0xc   :  { %375 = vmatpush.bf16.msra.mxu1 %v1035_v24  ;;  %v73_v53 = vpack.c.bf16 %v52_v51, %v51_v50  ;;  %v54_v61 = vld [vmem:[%s1565_s0 + $0xb8] sm:$0xff]  ;;  %v55_v6 = vld [vmem:[%s1565_s0 + $0xc0] sm:$0xff]  ;;  %v60_v27 = vld [vmem:[%s1565_s0 + $0xe8] sm:$0xff] }
   0xd   :  { %v74_v63 = vpack.c.bf16 %v54_v61, %v53_v60  ;;  %v58_v17 = vld [vmem:[%s1565_s0 + $0xd8] sm:$0xff]  ;;  %v1037_v50 = vld [vmem:[%s1570_s5 + $0x4] sm:$0xf] }
  0x10   :  { %376 = vmatpush.bf16.msra.mxu1 %v1034_v25 }
  0x14   :  { %377 = vmatpush.bf16.msra.mxu1 %v1033_v26  ;;  %v59_v26 = vld [vmem:[%s1565_s0 + $0xe0] sm:$0xff] }
  0x19   :  { %936 = vmatmul.msk.bf16.gmra.mxu0 %vm99_vm0, %v64_v7  ;;  %v56_v7 = vld [vmem:[%s1565_s0 + $0xc8] sm:$0xff] }
  0x1a   :  { %v75_v9 = vpack.c.bf16 %v56_v7, %v55_v6 }
  0x29   :  { %937 = vmatmul.msk.bf16.gmra.mxu0 %vm99_vm0, %v65_v10 }
  0x39   :  { %938 = vmatmul.msk.bf16.gmra.mxu0 %vm99_vm0, %v66_v13 }
  0x49   :  { %939 = vmatmul.msk.bf16.gmra.mxu0 %vm99_vm0, %v67_v16  ;;  %v57_v16 = vld [vmem:[%s1565_s0 + $0xd0] sm:$0xff] }
  0x59   :  { %940 = vmatmul.msk.bf16.gmra.mxu0 %vm99_vm0, %v68_v19  ;;  %v76_v19 = vpack.c.bf16 %v58_v17, %v57_v16 }
  0x69   :  { %941 = vmatmul.msk.bf16.gmra.mxu0 %vm99_vm0, %v69_v23 }
  0x79   :  { %942 = vmatmul.msk.bf16.gmra.mxu0 %vm99_vm0, %v70_v29  ;;  %v77_v29 = vpack.c.bf16 %v60_v27, %v59_v26 }
  0x86   :  { %v157_v33 = vpop.f32.mrf.mxu0 }
  0x87   :  { %v158_v35 = vadd.f32 %v1295_v34, %v157_v33 }
  0x89   :  { %943 = vmatmul.msk.bf16.gmra.mxu0 %vm99_vm0, %v71_v32  ;;  %v237_v38 = vmax.f32 %v158_v35, 0.0 }
  0x8e   :  { %v159_v36 = vpop.f32.mrf.mxu0 }
  0x8f   :  { %v160_v37 = vadd.f32 %v1295_v34, %v159_v36 }
  0x91   :  { %v238_v39 = vmax.f32 %v160_v37, 0.0  ;;  %v61_v37 = vld [vmem:[%s1565_s0 + $0xf0] sm:$0xff] }
  0x93   :  { %v269_v42 = vpack.c.bf16 %v238_v39, %v237_v38  ;;  %v62_v38 = vld [vmem:[%s1565_s0 + $0xf8] sm:$0xff] }
  0x94   :  { %v78_v40 = vpack.c.bf16 %v62_v38, %v61_v37 }
  0x95   :  { %967 = vmatmul.msk.bf16.vlgmr.msra.gmra.mxu1 %vm321_vm1, %v269_v42  ;;  %v993_v42 = vld [vmem:[%s1570_s5 + $0x10] sm:$0xf] }
  0x96   :  { %v162_v44 = vpop.f32.mrf.mxu0 }
  0x97   :  { %v163_v45 = vadd.f32 %v1295_v34, %v162_v44  ;;  %v1039_v44 = vld [vmem:[%s1570_s5 + $0x14] sm:$0xf] }
  0x99   :  { %944 = vmatmul.msk.bf16.gmra.mxu0 %vm99_vm0, %v72_v43  ;;  %v239_v48 = vmax.f32 %v163_v45, 0.0  ;;  %v1040_v43 = vld [vmem:[%s1570_s5 + $0x14] sm:$0xf0] }
  0x9a   :  { %v994_v45 = vor.u32 %v1040_v43, %v993_v42 }
  0x9c   :  { %591 = vmatpush.bf16.msra.mxu2 %v994_v45 }
  0x9e   :  { %v164_v46 = vpop.f32.mrf.mxu0 }
  0x9f   :  { %v165_v47 = vadd.f32 %v1295_v34, %v164_v46  ;;  %v995_v46 = vld [vmem:[%s1570_s5 + $0x18] sm:$0xf0] }
  0xa1   :  { %v240_v49 = vmax.f32 %v165_v47, 0.0  ;;  %v998_v47 = vor.u32 %v1039_v44, %v995_v46 }
  0xa3   :  { %v270_v52 = vpack.c.bf16 %v240_v49, %v239_v48  ;;  %680 = vmatpush.bf16.msra.mxu3 %v998_v47  ;;  %v985_v48 = vld [vmem:[%s1570_s5] sm:$0xf]  ;;  %v1038_v49 = vld [vmem:[%s1570_s5 + $0x4] sm:$0xf0] }
  0xa4   :  { %v986_v51 = vor.u32 %v1038_v49, %v985_v48 }
  0xa5   :  { %968 = vmatmul.msk.bf16.gmra.mxu1 %vm321_vm1, %v270_v52  ;;  %v987_v52 = vld [vmem:[%s1570_s5 + $0x8] sm:$0xf0] }
  0xa6   :  { %v167_v54 = vpop.f32.mrf.mxu0  ;;  %592 = vmatpush.bf16.msra.mxu2 %v986_v51 }
  0xa7   :  { %v168_v55 = vadd.f32 %v1295_v34, %v167_v54  ;;  %v990_v54 = vor.u32 %v1037_v50, %v987_v52 }
  0xa9   :  { %945 = vmatmul.msk.bf16.gmra.mxu0 %vm99_vm0, %v73_v53  ;;  %v241_v58 = vmax.f32 %v168_v55, 0.0  ;;  %681 = vmatpush.bf16.msra.mxu3 %v990_v54 }
  0xae   :  { %v169_v56 = vpop.f32.mrf.mxu0 }
  0xaf   :  { %v170_v57 = vadd.f32 %v1295_v34, %v169_v56 }
  0xb1   :  { %v242_v59 = vmax.f32 %v170_v57, 0.0 }
  0xb3   :  { %v271_v62 = vpack.c.bf16 %v242_v59, %v241_v58 }
  0xb5   :  { %969 = vmatmul.msk.bf16.gmra.mxu1 %vm321_vm1, %v271_v62 }
  0xb6   :  { %v172_v0 = vpop.f32.mrf.mxu0 }
  0xb7   :  { %v173_v1 = vadd.f32 %v1295_v34, %v172_v0 }
  0xb9   :  { %946 = vmatmul.msk.bf16.gmra.mxu0 %vm99_vm0, %v74_v63  ;;  %v243_v4 = vmax.f32 %v173_v1, 0.0 }
  0xbe   :  { %v174_v2 = vpop.f32.mrf.mxu0 }
  0xbf   :  { %v175_v3 = vadd.f32 %v1295_v34, %v174_v2 }
  0xc1   :  { %v244_v5 = vmax.f32 %v175_v3, 0.0 }
  0xc3   :  { %v272_v8 = vpack.c.bf16 %v244_v5, %v243_v4  ;;  %v1400_v4 = vld [vmem:[%s1569_s4] ss:$0 sm:$0xff] }
  0xc5   :  { %970 = vmatmul.msk.bf16.gmra.mxu1 %vm321_vm1, %v272_v8 }
  0xc6   :  { %v177_v10 = vpop.f32.mrf.mxu0 }
  0xc7   :  { %v178_v11 = vadd.f32 %v1295_v34, %v177_v10 }
  0xc9   :  { %947 = vmatmul.msk.bf16.gmra.mxu0 %vm99_vm0, %v75_v9  ;;  %v245_v14 = vmax.f32 %v178_v11, 0.0 }
  0xce   :  { %v179_v12 = vpop.f32.mrf.mxu0 }
  0xcf   :  { %v180_v13 = vadd.f32 %v1295_v34, %v179_v12 }
  0xd1   :  { %v246_v15 = vmax.f32 %v180_v13, 0.0 }
  0xd3   :  { %v273_v18 = vpack.c.bf16 %v246_v15, %v245_v14 }
  0xd5   :  { %971 = vmatmul.msk.bf16.gmra.mxu1 %vm321_vm1, %v273_v18 }
  0xd6   :  { %v182_v20 = vpop.f32.mrf.mxu0 }
  0xd7   :  { %v183_v21 = vadd.f32 %v1295_v34, %v182_v20 }
  0xd9   :  { %948 = vmatmul.msk.bf16.gmra.mxu0 %vm99_vm0, %v76_v19  ;;  %v247_v24 = vmax.f32 %v183_v21, 0.0 }
  0xde   :  { %v184_v22 = vpop.f32.mrf.mxu0 }
  0xdf   :  { %v185_v23 = vadd.f32 %v1295_v34, %v184_v22 }
  0xe1   :  { %v248_v25 = vmax.f32 %v185_v23, 0.0 }
  0xe3   :  { %v274_v28 = vpack.c.bf16 %v248_v25, %v247_v24 }
  0xe5   :  { %972 = vmatmul.msk.bf16.gmra.mxu1 %vm321_vm1, %v274_v28 }
  0xe6   :  { %v187_v30 = vpop.f32.mrf.mxu0 }
  0xe7   :  { %v188_v31 = vadd.f32 %v1295_v34, %v187_v30 }
  0xe9   :  { %949 = vmatmul.msk.bf16.gmra.mxu0 %vm99_vm0, %v77_v29  ;;  %v249_v35 = vmax.f32 %v188_v31, 0.0 }
  0xee   :  { %v189_v32 = vpop.f32.mrf.mxu0 }
  0xef   :  { %v190_v33 = vadd.f32 %v1295_v34, %v189_v32 }
  0xf1   :  { %v250_v36 = vmax.f32 %v190_v33, 0.0 }
  0xf3   :  { %v275_v39 = vpack.c.bf16 %v250_v36, %v249_v35 }
  0xf5   :  { %973 = vmatmul.msk.bf16.gmra.mxu1 %vm321_vm1, %v275_v39 }
  0xf6   :  { %v192_v41 = vpop.f32.mrf.mxu0 }
  0xf7   :  { %v193_v53 = vadd.f32 %v1295_v34, %v192_v41 }
  0xf9   :  { %950 = vmatmul.msk.bf16.gmra.mxu0 %vm99_vm0, %v78_v40  ;;  %v251_v57 = vmax.f32 %v193_v53, 0.0 }
  0xfe   :  { %v194_v55 = vpop.f32.mrf.mxu0 }
  0xff   :  { %v195_v56 = vadd.f32 %v1295_v34, %v194_v55 }
 0x101   :  { %v252_v58 = vmax.f32 %v195_v56, 0.0 }
 0x103   :  { %v276_v59 = vpack.c.bf16 %v252_v58, %v251_v57 }
 0x105   :  { %974 = vmatmul.msk.bf16.gmra.mxu1 %vm321_vm1, %v276_v59 }
 0x106   :  { %v197_v60 = vpop.f32.mrf.mxu0 }
 0x107   :  { %v198_v61 = vadd.f32 %v1295_v34, %v197_v60 }
 0x109   :  { %v253_v0 = vmax.f32 %v198_v61, 0.0 }
 0x10e   :  { %v199_v62 = vpop.f32.mrf.mxu0 }
 0x10f   :  { %v200_v63 = vadd.f32 %v1295_v34, %v199_v62 }
 0x111   :  { %v254_v1 = vmax.f32 %v200_v63, 0.0 }
 0x112   :  { %v379_v2 = vpop.f32.mrf.mxu1 }
 0x113   :  { %v277_v3 = vpack.c.bf16 %v254_v1, %v253_v0  ;;  %v380_v6 = vadd.f32 %v1400_v4, %v379_v2 }
 0x115   :  { %975 = vmatmul.msk.bf16.gmra.mxu1 %vm321_vm1, %v277_v3  ;;  %v459_v9 = vmax.f32 %v380_v6, 0.0 }
 0x116   :  { %v202_v5 = vpop.f32.mrf.mxu0 }
 0x117   :  { %v203_v10 = vadd.f32 %v1295_v34, %v202_v5 }
 0x119   :  { %v255_v15 = vmax.f32 %v203_v10, 0.0 }
 0x11a   :  { %v381_v7 = vpop.f32.mrf.mxu1 }
 0x11b   :  { %v382_v8 = vadd.f32 %v1400_v4, %v381_v7 }
 0x11d   :  { %v460_v11 = vmax.f32 %v382_v8, 0.0 }
 0x11e   :  { %v204_v12 = vpop.f32.mrf.mxu0 }
 0x11f   :  { %v205_v13 = vadd.f32 %v1295_v34, %v204_v12  ;;  %v491_v14 = vpack.c.bf16 %v460_v11, %v459_v9 }
 0x121   :  { %v256_v16 = vmax.f32 %v205_v13, 0.0  ;;  %999 = vmatmul.msk.bf16.vlgmr.msra.gmra.mxu2 %vm99_vm0, %v491_v14  ;;  %1015 = vmatmul.msk.bf16.vlgmr.msra.gmra.mxu3 %vm99_vm0, %v491_v14 }
 0x122   :  { %v384_v17 = vpop.f32.mrf.mxu1 }
 0x123   :  { %v278_v18 = vpack.c.bf16 %v256_v16, %v255_v15  ;;  %v385_v20 = vadd.f32 %v1400_v4, %v384_v17 }
 0x125   :  { %976 = vmatmul.msk.bf16.gmra.mxu1 %vm321_vm1, %v278_v18  ;;  %v461_v23 = vmax.f32 %v385_v20, 0.0 }
 0x126   :  { %v207_v19 = vpop.f32.mrf.mxu0 }
 0x127   :  { %v208_v24 = vadd.f32 %v1295_v34, %v207_v19 }
 0x129   :  { %v257_v29 = vmax.f32 %v208_v24, 0.0 }
 0x12a   :  { %v386_v21 = vpop.f32.mrf.mxu1 }
 0x12b   :  { %v387_v22 = vadd.f32 %v1400_v4, %v386_v21 }
 0x12d   :  { %v462_v25 = vmax.f32 %v387_v22, 0.0 }
 0x12e   :  { %v209_v26 = vpop.f32.mrf.mxu0 }
 0x12f   :  { %v210_v27 = vadd.f32 %v1295_v34, %v209_v26  ;;  %v492_v28 = vpack.c.bf16 %v462_v25, %v461_v23 }
 0x131   :  { %v258_v30 = vmax.f32 %v210_v27, 0.0  ;;  %1000 = vmatmul.msk.bf16.gmra.mxu2 %vm99_vm0, %v492_v28  ;;  %1016 = vmatmul.msk.bf16.gmra.mxu3 %vm99_vm0, %v492_v28 }
 0x132   :  { %v389_v31 = vpop.f32.mrf.mxu1 }
 0x133   :  { %v279_v32 = vpack.c.bf16 %v258_v30, %v257_v29  ;;  %v390_v35 = vadd.f32 %v1400_v4, %v389_v31 }
 0x135   :  { %977 = vmatmul.msk.bf16.gmra.mxu1 %vm321_vm1, %v279_v32  ;;  %v463_v38 = vmax.f32 %v390_v35, 0.0 }
 0x136   :  { %v212_v33 = vpop.f32.mrf.mxu0 }
 0x137   :  { %v213_v39 = vadd.f32 %v1295_v34, %v212_v33 }
 0x139   :  { %v259_v44 = vmax.f32 %v213_v39, 0.0 }
 0x13a   :  { %v391_v36 = vpop.f32.mrf.mxu1 }
 0x13b   :  { %v392_v37 = vadd.f32 %v1400_v4, %v391_v36 }
 0x13d   :  { %v464_v40 = vmax.f32 %v392_v37, 0.0 }
 0x13e   :  { %v214_v41 = vpop.f32.mrf.mxu0 }
 0x13f   :  { %v215_v42 = vadd.f32 %v1295_v34, %v214_v41  ;;  %v493_v43 = vpack.c.bf16 %v464_v40, %v463_v38 }
 0x141   :  { %v260_v45 = vmax.f32 %v215_v42, 0.0  ;;  %1001 = vmatmul.msk.bf16.gmra.mxu2 %vm99_vm0, %v493_v43  ;;  %1017 = vmatmul.msk.bf16.gmra.mxu3 %vm99_vm0, %v493_v43 }
 0x142   :  { %v394_v46 = vpop.f32.mrf.mxu1 }
 0x143   :  { %v280_v47 = vpack.c.bf16 %v260_v45, %v259_v44  ;;  %v395_v49 = vadd.f32 %v1400_v4, %v394_v46 }
 0x145   :  { %978 = vmatmul.msk.bf16.gmra.mxu1 %vm321_vm1, %v280_v47  ;;  %v465_v52 = vmax.f32 %v395_v49, 0.0 }
 0x146   :  { %v217_v48 = vpop.f32.mrf.mxu0 }
 0x147   :  { %v218_v53 = vadd.f32 %v1295_v34, %v217_v48 }
 0x149   :  { %v261_v58 = vmax.f32 %v218_v53, 0.0  ;;  %v511_v53 = vld [vmem:[%s1571_s6] sm:$0x3]  ;;  %s1163_s6 = smov [#allocation2]  }
 0x14a   :  { %v396_v50 = vpop.f32.mrf.mxu1  ;;  %s895_s26 = sshll.u32 %s1163_s6, 4  ;;  %s896_s26 = int_to_ptr.vmem [resolvable:$true] %s895_s26 }
 0x14b   :  { %v397_v51 = vadd.f32 %v1400_v4, %v396_v50 }
 0x14d   :  { %v466_v54 = vmax.f32 %v397_v51, 0.0 }
 0x14e   :  { %v219_v55 = vpop.f32.mrf.mxu0 }
 0x14f   :  { %v220_v56 = vadd.f32 %v1295_v34, %v219_v55  ;;  %v494_v57 = vpack.c.bf16 %v466_v54, %v465_v52  ;;  %v1463_v55 = vperm.slane %v511_v53, 0 }
 0x151   :  { %v262_v59 = vmax.f32 %v220_v56, 0.0  ;;  %1002 = vmatmul.msk.bf16.gmra.mxu2 %vm99_vm0, %v494_v57  ;;  %1018 = vmatmul.msk.bf16.gmra.mxu3 %vm99_vm0, %v494_v57  ;;  %v1465_v56 = vperm.slane %v511_v53, 1 }
 0x152   :  { %v399_v60 = vpop.f32.mrf.mxu1 }
 0x153   :  { %v281_v61 = vpack.c.bf16 %v262_v59, %v261_v58  ;;  %v400_v63 = vadd.f32 %v1400_v4, %v399_v60 }
 0x155   :  { %979 = vmatmul.msk.bf16.gmra.mxu1 %vm321_vm1, %v281_v61  ;;  %v467_v2 = vmax.f32 %v400_v63, 0.0 }
 0x156   :  { %v222_v62 = vpop.f32.mrf.mxu0 }
 0x157   :  { %v223_v3 = vadd.f32 %v1295_v34, %v222_v62 }
 0x159   :  { %v263_v9 = vmax.f32 %v223_v3, 0.0 }
 0x15a   :  { %v401_v0 = vpop.f32.mrf.mxu1 }
 0x15b   :  { %v402_v1 = vadd.f32 %v1400_v4, %v401_v0 }
 0x15d   :  { %v468_v5 = vmax.f32 %v402_v1, 0.0 }
 0x15e   :  { %v224_v6 = vpop.f32.mrf.mxu0 }
 0x15f   :  { %v495_v7 = vpack.c.bf16 %v468_v5, %v467_v2  ;;  %v225_v8 = vadd.f32 %v1295_v34, %v224_v6 }
 0x161   :  { %v264_v10 = vmax.f32 %v225_v8, 0.0  ;;  %1003 = vmatmul.msk.bf16.gmra.mxu2 %vm99_vm0, %v495_v7  ;;  %1019 = vmatmul.msk.bf16.gmra.mxu3 %vm99_vm0, %v495_v7 }
 0x162   :  { %v404_v11 = vpop.f32.mrf.mxu1 }
 0x163   :  { %v282_v12 = vpack.c.bf16 %v264_v10, %v263_v9  ;;  %v405_v14 = vadd.f32 %v1400_v4, %v404_v11 }
 0x165   :  { %980 = vmatmul.msk.bf16.gmra.mxu1 %vm321_vm1, %v282_v12  ;;  %v469_v17 = vmax.f32 %v405_v14, 0.0 }
 0x166   :  { %v227_v13 = vpop.f32.mrf.mxu0 }
 0x167   :  { %v228_v18 = vadd.f32 %v1295_v34, %v227_v13 }
 0x169   :  { %v265_v23 = vmax.f32 %v228_v18, 0.0 }
 0x16a   :  { %v406_v15 = vpop.f32.mrf.mxu1 }
 0x16b   :  { %v407_v16 = vadd.f32 %v1400_v4, %v406_v15 }
 0x16d   :  { %v470_v19 = vmax.f32 %v407_v16, 0.0 }
 0x16e   :  { %v229_v20 = vpop.f32.mrf.mxu0 }
 0x16f   :  { %v496_v21 = vpack.c.bf16 %v470_v19, %v469_v17  ;;  %v230_v22 = vadd.f32 %v1295_v34, %v229_v20 }
 0x171   :  { %v266_v24 = vmax.f32 %v230_v22, 0.0  ;;  %1004 = vmatmul.msk.bf16.gmra.mxu2 %vm99_vm0, %v496_v21  ;;  %1020 = vmatmul.msk.bf16.gmra.mxu3 %vm99_vm0, %v496_v21 }
 0x172   :  { %v409_v25 = vpop.f32.mrf.mxu1 }
 0x173   :  { %v283_v26 = vpack.c.bf16 %v266_v24, %v265_v23  ;;  %v410_v28 = vadd.f32 %v1400_v4, %v409_v25 }
 0x175   :  { %981 = vmatmul.msk.bf16.gmra.mxu1 %vm321_vm1, %v283_v26  ;;  %v471_v31 = vmax.f32 %v410_v28, 0.0 }
 0x176   :  { %v232_v27 = vpop.f32.mrf.mxu0 }
 0x177   :  { %v233_v32 = vadd.f32 %v1295_v34, %v232_v27 }
 0x179   :  { %v267_v38 = vmax.f32 %v233_v32, 0.0 }
 0x17a   :  { %v411_v29 = vpop.f32.mrf.mxu1 }
 0x17b   :  { %v412_v30 = vadd.f32 %v1400_v4, %v411_v29 }
 0x17d   :  { %v472_v33 = vmax.f32 %v412_v30, 0.0 }
 0x17e   :  { %v234_v35 = vpop.f32.mrf.mxu0 }
 0x17f   :  { %v497_v36 = vpack.c.bf16 %v472_v33, %v471_v31  ;;  %v235_v37 = vadd.f32 %v1295_v34, %v234_v35 }
 0x181   :  { %v268_v39 = vmax.f32 %v235_v37, 0.0  ;;  %1005 = vmatmul.msk.bf16.gmra.mxu2 %vm99_vm0, %v497_v36  ;;  %1021 = vmatmul.msk.bf16.gmra.mxu3 %vm99_vm0, %v497_v36 }
 0x182   :  { %v414_v40 = vpop.f32.mrf.mxu1 }
 0x183   :  { %v284_v41 = vpack.c.bf16 %v268_v39, %v267_v38  ;;  %v415_v42 = vadd.f32 %v1400_v4, %v414_v40 }
 0x185   :  { %982 = vmatmul.msk.bf16.gmra.mxu1 %vm321_vm1, %v284_v41  ;;  %v473_v45 = vmax.f32 %v415_v42, 0.0 }
 0x18a   :  { %v416_v43 = vpop.f32.mrf.mxu1 }
 0x18b   :  { %v417_v44 = vadd.f32 %v1400_v4, %v416_v43 }
 0x18d   :  { %v474_v46 = vmax.f32 %v417_v44, 0.0 }
 0x18f   :  { %v498_v47 = vpack.c.bf16 %v474_v46, %v473_v45 }
 0x191   :  { %1006 = vmatmul.msk.bf16.gmra.mxu2 %vm99_vm0, %v498_v47  ;;  %1022 = vmatmul.msk.bf16.gmra.mxu3 %vm99_vm0, %v498_v47 }
 0x192   :  { %v419_v34 = vpop.f32.mrf.mxu1 }
 0x193   :  { %v420_v48 = vadd.f32 %v1400_v4, %v419_v34 }
 0x195   :  { %v475_v51 = vmax.f32 %v420_v48, 0.0 }
 0x19a   :  { %v421_v49 = vpop.f32.mrf.mxu1 }
 0x19b   :  { %v422_v50 = vadd.f32 %v1400_v4, %v421_v49 }
 0x19d   :  { %v476_v52 = vmax.f32 %v422_v50, 0.0 }
 0x19f   :  { %v499_v54 = vpack.c.bf16 %v476_v52, %v475_v51 }
 0x1a1   :  { %1007 = vmatmul.msk.bf16.gmra.mxu2 %vm99_vm0, %v499_v54  ;;  %1023 = vmatmul.msk.bf16.gmra.mxu3 %vm99_vm0, %v499_v54 }
 0x1a2   :  { %v424_v57 = vpop.f32.mrf.mxu1 }
 0x1a3   :  { %v425_v63 = vadd.f32 %v1400_v4, %v424_v57 }
 0x1a4   :  { %v594_v58 = vpop.f32.mrf.mxu2  ;;  %v683_v59 = vpop.f32.mrf.mxu3 }
 0x1a5   :  { %v595_v60 = vadd.f32 %v594_v58, %v1463_v55  ;;  %v684_v61 = vadd.f32 %v683_v59, %v1465_v56  ;;  %v477_v5 = vmax.f32 %v425_v63, 0.0 }
 0x1a7   :  { %763 = vst [vmem:[#allocation2] sm:$0xff] %v595_v60  ;;  %v795_v62 = vmul.f32 1.442695, %v684_v61 }
 0x1a9   :  { %1047 = vpow2.f32 %v795_v62 }
 0x1aa   :  { %v426_v0 = vpop.f32.mrf.mxu1 }
 0x1ab   :  { %v427_v1 = vadd.f32 %v1400_v4, %v426_v0 }
 0x1ac   :  { %v596_v2 = vpop.f32.mrf.mxu2  ;;  %v685_v3 = vpop.f32.mrf.mxu3 }
 0x1ad   :  { %v478_v6 = vmax.f32 %v427_v1, 0.0  ;;  %v597_v7 = vadd.f32 %v596_v2, %v1463_v55  ;;  %v686_v8 = vadd.f32 %v685_v3, %v1465_v56 }
 0x1af   :  { %v1048_v9 = vpop.eup %1047  ;;  %v500_v10 = vpack.c.bf16 %v478_v6, %v477_v5  ;;  %764 = vst [vmem:[#allocation2 + $0x8] sm:$0xff] %v597_v7  ;;  %v797_v11 = vmul.f32 1.442695, %v686_v8 }
 0x1b0   :  { %859 = vst [vmem:[#allocation4] sm:$0xff] %v1048_v9 }
 0x1b1   :  { %1049 = vpow2.f32 %v797_v11  ;;  %1008 = vmatmul.msk.bf16.gmra.mxu2 %vm99_vm0, %v500_v10  ;;  %1024 = vmatmul.msk.bf16.gmra.mxu3 %vm99_vm0, %v500_v10 }
 0x1b2   :  { %v429_v12 = vpop.f32.mrf.mxu1 }
 0x1b3   :  { %v430_v19 = vadd.f32 %v1400_v4, %v429_v12 }
 0x1b4   :  { %v599_v13 = vpop.f32.mrf.mxu2  ;;  %v688_v14 = vpop.f32.mrf.mxu3 }
 0x1b5   :  { %v600_v15 = vadd.f32 %v599_v13, %v1463_v55  ;;  %v689_v16 = vadd.f32 %v688_v14, %v1465_v56  ;;  %v479_v24 = vmax.f32 %v430_v19, 0.0 }
 0x1b7   :  { %v1050_v17 = vpop.eup %1049  ;;  %765 = vst [vmem:[#allocation2 + $0x10] sm:$0xff] %v600_v15  ;;  %v799_v18 = vmul.f32 1.442695, %v689_v16 }
 0x1b8   :  { %860 = vst [vmem:[#allocation4 + $0x8] sm:$0xff] %v1050_v17 }
 0x1b9   :  { %1051 = vpow2.f32 %v799_v18 }
 0x1ba   :  { %v431_v20 = vpop.f32.mrf.mxu1 }
 0x1bb   :  { %v432_v21 = vadd.f32 %v1400_v4, %v431_v20 }
 0x1bc   :  { %v601_v22 = vpop.f32.mrf.mxu2  ;;  %v690_v23 = vpop.f32.mrf.mxu3 }
 0x1bd   :  { %v480_v25 = vmax.f32 %v432_v21, 0.0  ;;  %v602_v26 = vadd.f32 %v601_v22, %v1463_v55  ;;  %v691_v27 = vadd.f32 %v690_v23, %v1465_v56 }
 0x1bf   :  { %v1052_v28 = vpop.eup %1051  ;;  %v501_v29 = vpack.c.bf16 %v480_v25, %v479_v24  ;;  %766 = vst [vmem:[#allocation2 + $0x18] sm:$0xff] %v602_v26  ;;  %v801_v30 = vmul.f32 1.442695, %v691_v27 }
 0x1c0   :  { %861 = vst [vmem:[#allocation4 + $0x10] sm:$0xff] %v1052_v28 }
 0x1c1   :  { %1053 = vpow2.f32 %v801_v30  ;;  %1009 = vmatmul.msk.bf16.gmra.mxu2 %vm99_vm0, %v501_v29  ;;  %1025 = vmatmul.msk.bf16.gmra.mxu3 %vm99_vm0, %v501_v29 }
 0x1c2   :  { %v434_v31 = vpop.f32.mrf.mxu1 }
 0x1c3   :  { %v435_v39 = vadd.f32 %v1400_v4, %v434_v31 }
 0x1c4   :  { %v604_v32 = vpop.f32.mrf.mxu2  ;;  %v693_v33 = vpop.f32.mrf.mxu3 }
 0x1c5   :  { %v605_v35 = vadd.f32 %v604_v32, %v1463_v55  ;;  %v694_v36 = vadd.f32 %v693_v33, %v1465_v56  ;;  %v481_v44 = vmax.f32 %v435_v39, 0.0 }
 0x1c7   :  { %v1054_v37 = vpop.eup %1053  ;;  %767 = vst [vmem:[#allocation2 + $0x20] sm:$0xff] %v605_v35  ;;  %v803_v38 = vmul.f32 1.442695, %v694_v36 }
 0x1c8   :  { %862 = vst [vmem:[#allocation4 + $0x18] sm:$0xff] %v1054_v37 }
 0x1c9   :  { %1055 = vpow2.f32 %v803_v38 }
 0x1ca   :  { %v436_v40 = vpop.f32.mrf.mxu1 }
 0x1cb   :  { %v437_v41 = vadd.f32 %v1400_v4, %v436_v40 }
 0x1cc   :  { %v606_v42 = vpop.f32.mrf.mxu2  ;;  %v695_v43 = vpop.f32.mrf.mxu3 }
 0x1cd   :  { %v482_v45 = vmax.f32 %v437_v41, 0.0  ;;  %v607_v46 = vadd.f32 %v606_v42, %v1463_v55  ;;  %v696_v47 = vadd.f32 %v695_v43, %v1465_v56 }
 0x1cf   :  { %v1056_v34 = vpop.eup %1055  ;;  %v502_v48 = vpack.c.bf16 %v482_v45, %v481_v44  ;;  %768 = vst [vmem:[#allocation2 + $0x28] sm:$0xff] %v607_v46  ;;  %v805_v49 = vmul.f32 1.442695, %v696_v47 }
 0x1d0   :  { %863 = vst [vmem:[#allocation4 + $0x20] sm:$0xff] %v1056_v34 }
 0x1d1   :  { %1057 = vpow2.f32 %v805_v49  ;;  %1010 = vmatmul.msk.bf16.gmra.mxu2 %vm99_vm0, %v502_v48  ;;  %1026 = vmatmul.msk.bf16.gmra.mxu3 %vm99_vm0, %v502_v48 }
 0x1d2   :  { %v439_v50 = vpop.f32.mrf.mxu1 }
 0x1d3   :  { %v440_v59 = vadd.f32 %v1400_v4, %v439_v50 }
 0x1d4   :  { %v609_v51 = vpop.f32.mrf.mxu2  ;;  %v698_v52 = vpop.f32.mrf.mxu3 }
 0x1d5   :  { %v610_v53 = vadd.f32 %v609_v51, %v1463_v55  ;;  %v699_v54 = vadd.f32 %v698_v52, %v1465_v56  ;;  %v483_v0 = vmax.f32 %v440_v59, 0.0 }
 0x1d7   :  { %v1058_v57 = vpop.eup %1057  ;;  %769 = vst [vmem:[#allocation2 + $0x30] sm:$0xff] %v610_v53  ;;  %v807_v58 = vmul.f32 1.442695, %v699_v54 }
 0x1d8   :  { %864 = vst [vmem:[#allocation4 + $0x28] sm:$0xff] %v1058_v57 }
 0x1d9   :  { %1059 = vpow2.f32 %v807_v58 }
 0x1da   :  { %v441_v60 = vpop.f32.mrf.mxu1 }
 0x1db   :  { %v442_v61 = vadd.f32 %v1400_v4, %v441_v60 }
 0x1dc   :  { %v611_v62 = vpop.f32.mrf.mxu2  ;;  %v700_v63 = vpop.f32.mrf.mxu3 }
 0x1dd   :  { %v484_v1 = vmax.f32 %v442_v61, 0.0  ;;  %v612_v2 = vadd.f32 %v611_v62, %v1463_v55  ;;  %v701_v3 = vadd.f32 %v700_v63, %v1465_v56 }
 0x1df   :  { %v1060_v5 = vpop.eup %1059  ;;  %v503_v6 = vpack.c.bf16 %v484_v1, %v483_v0  ;;  %770 = vst [vmem:[#allocation2 + $0x38] sm:$0xff] %v612_v2  ;;  %v809_v7 = vmul.f32 1.442695, %v701_v3 }
 0x1e0   :  { %865 = vst [vmem:[#allocation4 + $0x30] sm:$0xff] %v1060_v5 }
 0x1e1   :  { %1061 = vpow2.f32 %v809_v7  ;;  %1011 = vmatmul.msk.bf16.gmra.mxu2 %vm99_vm0, %v503_v6  ;;  %1027 = vmatmul.msk.bf16.gmra.mxu3 %vm99_vm0, %v503_v6 }
 0x1e2   :  { %v444_v8 = vpop.f32.mrf.mxu1 }
 0x1e3   :  { %v445_v15 = vadd.f32 %v1400_v4, %v444_v8 }
 0x1e4   :  { %v614_v9 = vpop.f32.mrf.mxu2  ;;  %v703_v10 = vpop.f32.mrf.mxu3 }
 0x1e5   :  { %v615_v11 = vadd.f32 %v614_v9, %v1463_v55  ;;  %v704_v12 = vadd.f32 %v703_v10, %v1465_v56  ;;  %v485_v20 = vmax.f32 %v445_v15, 0.0 }
 0x1e7   :  { %v1062_v13 = vpop.eup %1061  ;;  %771 = vst [vmem:[#allocation2 + $0x40] sm:$0xff] %v615_v11  ;;  %v811_v14 = vmul.f32 1.442695, %v704_v12 }
 0x1e8   :  { %866 = vst [vmem:[#allocation4 + $0x38] sm:$0xff] %v1062_v13 }
 0x1e9   :  { %1063 = vpow2.f32 %v811_v14 }
 0x1ea   :  { %v446_v16 = vpop.f32.mrf.mxu1 }
 0x1eb   :  { %v447_v17 = vadd.f32 %v1400_v4, %v446_v16 }
 0x1ec   :  { %v616_v18 = vpop.f32.mrf.mxu2  ;;  %v705_v19 = vpop.f32.mrf.mxu3 }
 0x1ed   :  { %v486_v21 = vmax.f32 %v447_v17, 0.0  ;;  %v617_v22 = vadd.f32 %v616_v18, %v1463_v55  ;;  %v706_v23 = vadd.f32 %v705_v19, %v1465_v56 }
 0x1ef   :  { %v1064_v24 = vpop.eup %1063  ;;  %v504_v25 = vpack.c.bf16 %v486_v21, %v485_v20  ;;  %772 = vst [vmem:[#allocation2 + $0x48] sm:$0xff] %v617_v22  ;;  %v813_v26 = vmul.f32 1.442695, %v706_v23 }
 0x1f0   :  { %867 = vst [vmem:[#allocation4 + $0x40] sm:$0xff] %v1064_v24 }
 0x1f1   :  { %1065 = vpow2.f32 %v813_v26  ;;  %1012 = vmatmul.msk.bf16.gmra.mxu2 %vm99_vm0, %v504_v25  ;;  %1028 = vmatmul.msk.bf16.gmra.mxu3 %vm99_vm0, %v504_v25 }
 0x1f2   :  { %v449_v27 = vpop.f32.mrf.mxu1 }
 0x1f3   :  { %v450_v35 = vadd.f32 %v1400_v4, %v449_v27 }
 0x1f4   :  { %v619_v28 = vpop.f32.mrf.mxu2  ;;  %v708_v29 = vpop.f32.mrf.mxu3 }
 0x1f5   :  { %v620_v30 = vadd.f32 %v619_v28, %v1463_v55  ;;  %v709_v31 = vadd.f32 %v708_v29, %v1465_v56  ;;  %v487_v40 = vmax.f32 %v450_v35, 0.0 }
 0x1f7   :  { %v1066_v32 = vpop.eup %1065  ;;  %773 = vst [vmem:[#allocation2 + $0x50] sm:$0xff] %v620_v30  ;;  %v815_v33 = vmul.f32 1.442695, %v709_v31 }
 0x1f8   :  { %868 = vst [vmem:[#allocation4 + $0x48] sm:$0xff] %v1066_v32 }
 0x1f9   :  { %1067 = vpow2.f32 %v815_v33 }
 0x1fa   :  { %v451_v36 = vpop.f32.mrf.mxu1 }
 0x1fb   :  { %v452_v37 = vadd.f32 %v1400_v4, %v451_v36 }
 0x1fc   :  { %v621_v38 = vpop.f32.mrf.mxu2  ;;  %v710_v39 = vpop.f32.mrf.mxu3 }
 0x1fd   :  { %v488_v41 = vmax.f32 %v452_v37, 0.0  ;;  %v622_v42 = vadd.f32 %v621_v38, %v1463_v55  ;;  %v711_v43 = vadd.f32 %v710_v39, %v1465_v56 }
 0x1ff   :  { %v1068_v44 = vpop.eup %1067  ;;  %v505_v45 = vpack.c.bf16 %v488_v41, %v487_v40  ;;  %774 = vst [vmem:[#allocation2 + $0x58] sm:$0xff] %v622_v42  ;;  %v817_v46 = vmul.f32 1.442695, %v711_v43 }
 0x200   :  { %869 = vst [vmem:[#allocation4 + $0x50] sm:$0xff] %v1068_v44 }
 0x201   :  { %1069 = vpow2.f32 %v817_v46  ;;  %1013 = vmatmul.msk.bf16.gmra.mxu2 %vm99_vm0, %v505_v45  ;;  %1029 = vmatmul.msk.bf16.gmra.mxu3 %vm99_vm0, %v505_v45 }
 0x202   :  { %v454_v47 = vpop.f32.mrf.mxu1 }
 0x203   :  { %v455_v53 = vadd.f32 %v1400_v4, %v454_v47 }
 0x204   :  { %v624_v34 = vpop.f32.mrf.mxu2  ;;  %v713_v48 = vpop.f32.mrf.mxu3 }
 0x205   :  { %v625_v49 = vadd.f32 %v624_v34, %v1463_v55  ;;  %v714_v50 = vadd.f32 %v713_v48, %v1465_v56  ;;  %v489_v60 = vmax.f32 %v455_v53, 0.0 }
 0x207   :  { %v1070_v51 = vpop.eup %1069  ;;  %775 = vst [vmem:[#allocation2 + $0x60] sm:$0xff] %v625_v49  ;;  %v819_v52 = vmul.f32 1.442695, %v714_v50 }
 0x208   :  { %870 = vst [vmem:[#allocation4 + $0x58] sm:$0xff] %v1070_v51 }
 0x209   :  { %1071 = vpow2.f32 %v819_v52 }
 0x20a   :  { %v456_v54 = vpop.f32.mrf.mxu1 }
 0x20b   :  { %v457_v57 = vadd.f32 %v1400_v4, %v456_v54 }
 0x20c   :  { %v626_v58 = vpop.f32.mrf.mxu2  ;;  %v715_v59 = vpop.f32.mrf.mxu3 }
 0x20d   :  { %v490_v61 = vmax.f32 %v457_v57, 0.0  ;;  %v627_v62 = vadd.f32 %v626_v58, %v1463_v55  ;;  %v716_v63 = vadd.f32 %v715_v59, %v1465_v56 }
 0x20f   :  { %v1072_v0 = vpop.eup %1071  ;;  %v506_v1 = vpack.c.bf16 %v490_v61, %v489_v60  ;;  %776 = vst [vmem:[#allocation2 + $0x68] sm:$0xff] %v627_v62  ;;  %v821_v2 = vmul.f32 1.442695, %v716_v63 }
 0x210   :  { %871 = vst [vmem:[#allocation4 + $0x60] sm:$0xff] %v1072_v0 }
 0x211   :  { %1073 = vpow2.f32 %v821_v2  ;;  %1014 = vmatmul.msk.bf16.gmra.mxu2 %vm99_vm0, %v506_v1  ;;  %1030 = vmatmul.msk.bf16.gmra.mxu3 %vm99_vm0, %v506_v1 }
 0x214   :  { %v629_v3 = vpop.f32.mrf.mxu2  ;;  %v718_v4 = vpop.f32.mrf.mxu3 }
 0x215   :  { %v630_v5 = vadd.f32 %v629_v3, %v1463_v55  ;;  %v719_v6 = vadd.f32 %v718_v4, %v1465_v56 }
 0x217   :  { %v1074_v7 = vpop.eup %1073  ;;  %777 = vst [vmem:[#allocation2 + $0x70] sm:$0xff] %v630_v5  ;;  %v823_v8 = vmul.f32 1.442695, %v719_v6 }
 0x218   :  { %872 = vst [vmem:[#allocation4 + $0x68] sm:$0xff] %v1074_v7 }
 0x219   :  { %1075 = vpow2.f32 %v823_v8 }
 0x21c   :  { %v631_v9 = vpop.f32.mrf.mxu2  ;;  %v720_v10 = vpop.f32.mrf.mxu3 }
 0x21d   :  { %v632_v11 = vadd.f32 %v631_v9, %v1463_v55  ;;  %v721_v12 = vadd.f32 %v720_v10, %v1465_v56 }
 0x21f   :  { %v1076_v13 = vpop.eup %1075  ;;  %778 = vst [vmem:[#allocation2 + $0x78] sm:$0xff] %v632_v11  ;;  %v825_v14 = vmul.f32 1.442695, %v721_v12 }
 0x220   :  { %873 = vst [vmem:[#allocation4 + $0x70] sm:$0xff] %v1076_v13 }
 0x221   :  { %1077 = vpow2.f32 %v825_v14 }
 0x224   :  { %v634_v15 = vpop.f32.mrf.mxu2  ;;  %v723_v16 = vpop.f32.mrf.mxu3 }
 0x225   :  { %v635_v17 = vadd.f32 %v634_v15, %v1463_v55  ;;  %v724_v18 = vadd.f32 %v723_v16, %v1465_v56 }
 0x227   :  { %v1078_v19 = vpop.eup %1077  ;;  %779 = vst [vmem:[#allocation2 + $0x80] sm:$0xff] %v635_v17  ;;  %v827_v20 = vmul.f32 1.442695, %v724_v18 }
 0x228   :  { %874 = vst [vmem:[#allocation4 + $0x78] sm:$0xff] %v1078_v19 }
 0x229   :  { %1079 = vpow2.f32 %v827_v20 }
 0x22c   :  { %v636_v21 = vpop.f32.mrf.mxu2  ;;  %v725_v22 = vpop.f32.mrf.mxu3 }
 0x22d   :  { %v637_v23 = vadd.f32 %v636_v21, %v1463_v55  ;;  %v726_v24 = vadd.f32 %v725_v22, %v1465_v56 }
 0x22f   :  { %v1080_v25 = vpop.eup %1079  ;;  %780 = vst [vmem:[#allocation2 + $0x88] sm:$0xff] %v637_v23  ;;  %v829_v26 = vmul.f32 1.442695, %v726_v24 }
 0x230   :  { %875 = vst [vmem:[#allocation4 + $0x80] sm:$0xff] %v1080_v25 }
 0x231   :  { %1081 = vpow2.f32 %v829_v26 }
 0x234   :  { %v639_v27 = vpop.f32.mrf.mxu2  ;;  %v728_v28 = vpop.f32.mrf.mxu3 }
 0x235   :  { %v640_v29 = vadd.f32 %v639_v27, %v1463_v55  ;;  %v729_v30 = vadd.f32 %v728_v28, %v1465_v56 }
 0x237   :  { %v1082_v31 = vpop.eup %1081  ;;  %781 = vst [vmem:[#allocation2 + $0x90] sm:$0xff] %v640_v29  ;;  %v831_v32 = vmul.f32 1.442695, %v729_v30 }
 0x238   :  { %876 = vst [vmem:[#allocation4 + $0x88] sm:$0xff] %v1082_v31 }
 0x239   :  { %1083 = vpow2.f32 %v831_v32 }
 0x23c   :  { %v641_v33 = vpop.f32.mrf.mxu2  ;;  %v730_v35 = vpop.f32.mrf.mxu3 }
 0x23d   :  { %v642_v36 = vadd.f32 %v641_v33, %v1463_v55  ;;  %v731_v37 = vadd.f32 %v730_v35, %v1465_v56 }
 0x23f   :  { %v1084_v38 = vpop.eup %1083  ;;  %782 = vst [vmem:[#allocation2 + $0x98] sm:$0xff] %v642_v36  ;;  %v833_v39 = vmul.f32 1.442695, %v731_v37 }
 0x240   :  { %877 = vst [vmem:[#allocation4 + $0x90] sm:$0xff] %v1084_v38 }
 0x241   :  { %1085 = vpow2.f32 %v833_v39 }
 0x244   :  { %v644_v40 = vpop.f32.mrf.mxu2  ;;  %v733_v41 = vpop.f32.mrf.mxu3 }
 0x245   :  { %v645_v42 = vadd.f32 %v644_v40, %v1463_v55  ;;  %v734_v43 = vadd.f32 %v733_v41, %v1465_v56 }
 0x247   :  { %v1086_v44 = vpop.eup %1085  ;;  %783 = vst [vmem:[#allocation2 + $0xa0] sm:$0xff] %v645_v42  ;;  %v835_v45 = vmul.f32 1.442695, %v734_v43 }
 0x248   :  { %878 = vst [vmem:[#allocation4 + $0x98] sm:$0xff] %v1086_v44 }
 0x249   :  { %1087 = vpow2.f32 %v835_v45 }
 0x24c   :  { %v646_v46 = vpop.f32.mrf.mxu2  ;;  %v735_v47 = vpop.f32.mrf.mxu3 }
 0x24d   :  { %v647_v34 = vadd.f32 %v646_v46, %v1463_v55  ;;  %v736_v48 = vadd.f32 %v735_v47, %v1465_v56 }
 0x24f   :  { %v1088_v49 = vpop.eup %1087  ;;  %784 = vst [vmem:[#allocation2 + $0xa8] sm:$0xff] %v647_v34  ;;  %v837_v50 = vmul.f32 1.442695, %v736_v48 }
 0x250   :  { %879 = vst [vmem:[#allocation4 + $0xa0] sm:$0xff] %v1088_v49 }
 0x251   :  { %1089 = vpow2.f32 %v837_v50 }
 0x254   :  { %v649_v51 = vpop.f32.mrf.mxu2  ;;  %v738_v52 = vpop.f32.mrf.mxu3 }
 0x255   :  { %v650_v53 = vadd.f32 %v649_v51, %v1463_v55  ;;  %v739_v54 = vadd.f32 %v738_v52, %v1465_v56 }
 0x257   :  { %v1090_v57 = vpop.eup %1089  ;;  %785 = vst [vmem:[#allocation2 + $0xb0] sm:$0xff] %v650_v53  ;;  %v839_v58 = vmul.f32 1.442695, %v739_v54 }
 0x258   :  { %880 = vst [vmem:[#allocation4 + $0xa8] sm:$0xff] %v1090_v57 }
 0x259   :  { %1091 = vpow2.f32 %v839_v58 }
 0x25c   :  { %v651_v59 = vpop.f32.mrf.mxu2  ;;  %v740_v60 = vpop.f32.mrf.mxu3 }
 0x25d   :  { %v652_v61 = vadd.f32 %v651_v59, %v1463_v55  ;;  %v741_v62 = vadd.f32 %v740_v60, %v1465_v56 }
 0x25f   :  { %v1092_v63 = vpop.eup %1091  ;;  %786 = vst [vmem:[#allocation2 + $0xb8] sm:$0xff] %v652_v61  ;;  %v841_v0 = vmul.f32 1.442695, %v741_v62 }
 0x260   :  { %881 = vst [vmem:[#allocation4 + $0xb0] sm:$0xff] %v1092_v63 }
 0x261   :  { %1093 = vpow2.f32 %v841_v0 }
 0x264   :  { %v654_v1 = vpop.f32.mrf.mxu2  ;;  %v743_v2 = vpop.f32.mrf.mxu3 }
 0x265   :  { %v655_v3 = vadd.f32 %v654_v1, %v1463_v55  ;;  %v744_v4 = vadd.f32 %v743_v2, %v1465_v56 }
 0x267   :  { %v1094_v5 = vpop.eup %1093  ;;  %787 = vst [vmem:[#allocation2 + $0xc0] sm:$0xff] %v655_v3  ;;  %v843_v6 = vmul.f32 1.442695, %v744_v4 }
 0x268   :  { %882 = vst [vmem:[#allocation4 + $0xb8] sm:$0xff] %v1094_v5 }
 0x269   :  { %1095 = vpow2.f32 %v843_v6 }
 0x26c   :  { %v656_v7 = vpop.f32.mrf.mxu2  ;;  %v745_v8 = vpop.f32.mrf.mxu3 }
 0x26d   :  { %v657_v9 = vadd.f32 %v656_v7, %v1463_v55  ;;  %v746_v10 = vadd.f32 %v745_v8, %v1465_v56 }
 0x26f   :  { %v1096_v11 = vpop.eup %1095  ;;  %788 = vst [vmem:[#allocation2 + $0xc8] sm:$0xff] %v657_v9  ;;  %v845_v12 = vmul.f32 1.442695, %v746_v10 }
 0x270   :  { %883 = vst [vmem:[#allocation4 + $0xc0] sm:$0xff] %v1096_v11 }
 0x271   :  { %1097 = vpow2.f32 %v845_v12 }
 0x274   :  { %v659_v13 = vpop.f32.mrf.mxu2  ;;  %v748_v14 = vpop.f32.mrf.mxu3 }
 0x275   :  { %v660_v15 = vadd.f32 %v659_v13, %v1463_v55  ;;  %v749_v16 = vadd.f32 %v748_v14, %v1465_v56 }
 0x277   :  { %v1098_v17 = vpop.eup %1097  ;;  %789 = vst [vmem:[#allocation2 + $0xd0] sm:$0xff] %v660_v15  ;;  %v847_v18 = vmul.f32 1.442695, %v749_v16 }
 0x278   :  { %884 = vst [vmem:[#allocation4 + $0xc8] sm:$0xff] %v1098_v17 }
 0x279   :  { %1099 = vpow2.f32 %v847_v18 }
 0x27c   :  { %v661_v19 = vpop.f32.mrf.mxu2  ;;  %v750_v20 = vpop.f32.mrf.mxu3 }
 0x27d   :  { %v662_v21 = vadd.f32 %v661_v19, %v1463_v55  ;;  %v751_v22 = vadd.f32 %v750_v20, %v1465_v56 }
 0x27f   :  { %v1100_v23 = vpop.eup %1099  ;;  %790 = vst [vmem:[#allocation2 + $0xd8] sm:$0xff] %v662_v21  ;;  %v849_v24 = vmul.f32 1.442695, %v751_v22 }
 0x280   :  { %885 = vst [vmem:[#allocation4 + $0xd0] sm:$0xff] %v1100_v23 }
 0x281   :  { %1101 = vpow2.f32 %v849_v24 }
 0x284   :  { %v664_v25 = vpop.f32.mrf.mxu2  ;;  %v753_v26 = vpop.f32.mrf.mxu3 }
 0x285   :  { %v665_v27 = vadd.f32 %v664_v25, %v1463_v55  ;;  %v754_v28 = vadd.f32 %v753_v26, %v1465_v56 }
 0x287   :  { %v1102_v29 = vpop.eup %1101  ;;  %791 = vst [vmem:[#allocation2 + $0xe0] sm:$0xff] %v665_v27  ;;  %v851_v30 = vmul.f32 1.442695, %v754_v28 }
 0x288   :  { %886 = vst [vmem:[#allocation4 + $0xd8] sm:$0xff] %v1102_v29 }
 0x289   :  { %1103 = vpow2.f32 %v851_v30 }
 0x28c   :  { %v666_v31 = vpop.f32.mrf.mxu2  ;;  %v755_v32 = vpop.f32.mrf.mxu3 }
 0x28d   :  { %v667_v33 = vadd.f32 %v666_v31, %v1463_v55  ;;  %v756_v35 = vadd.f32 %v755_v32, %v1465_v56 }
 0x28f   :  { %v1104_v36 = vpop.eup %1103  ;;  %792 = vst [vmem:[#allocation2 + $0xe8] sm:$0xff] %v667_v33  ;;  %v853_v37 = vmul.f32 1.442695, %v756_v35 }
 0x290   :  { %887 = vst [vmem:[#allocation4 + $0xe0] sm:$0xff] %v1104_v36 }
 0x291   :  { %1105 = vpow2.f32 %v853_v37 }
 0x294   :  { %v669_v38 = vpop.f32.mrf.mxu2  ;;  %v758_v39 = vpop.f32.mrf.mxu3 }
 0x295   :  { %v670_v40 = vadd.f32 %v669_v38, %v1463_v55  ;;  %v759_v41 = vadd.f32 %v758_v39, %v1465_v56 }
 0x297   :  { %v1106_v42 = vpop.eup %1105  ;;  %793 = vst [vmem:[#allocation2 + $0xf0] sm:$0xff] %v670_v40  ;;  %v855_v43 = vmul.f32 1.442695, %v759_v41 }
 0x298   :  { %888 = vst [vmem:[#allocation4 + $0xe8] sm:$0xff] %v1106_v42 }
 0x299   :  { %1107 = vpow2.f32 %v855_v43 }
 0x29c   :  { %v671_v44 = vpop.f32.mrf.mxu2  ;;  %v760_v45 = vpop.f32.mrf.mxu3 }
 0x29d   :  { %v672_v46 = vadd.f32 %v671_v44, %v1463_v55  ;;  %v761_v47 = vadd.f32 %v760_v45, %v1465_v56 }
 0x29f   :  { %v1108_v34 = vpop.eup %1107  ;;  %794 = vst [vmem:[#allocation2 + $0xf8] sm:$0xff] %v672_v46  ;;  %v857_v48 = vmul.f32 1.442695, %v761_v47 }
 0x2a0   :  { %889 = vst [vmem:[#allocation4 + $0xf0] sm:$0xff] %v1108_v34  ;;  %903 = dma.vmem_to_hbm [thread:$0]  %s896_s26, 4096, %s898_s3, [#allocation3], %s1164_s29, %s1164_s29, %s1165_s30  }
 0x2a1   :  { %1109 = vpow2.f32 %v857_v48 }
 0x2a7   :  { %v1110_v49 = vpop.eup %1109 }
 0x2a8   :  { %890 = vst [vmem:[#allocation4 + $0xf8] sm:$0xff] %v1110_v49 }
 0x2a9   :  { %916 = dma.vmem_to_hbm [thread:$0]  %s909_s10, 4096, %s911_s2, [#allocation5], %s1164_s29, %s1164_s29, %s1165_s30  }
 0x2aa   :  { %1159 = dma.done.wait [#allocation3], 4096  }
 0x2ab   :  { %1160 = vsyncadd [#allocation3], 4294963200 }
 0x2ac   :  { %1161 = dma.done.wait [#allocation5], 4096  }
 0x2ad   :  { %1162 = vsyncadd [#allocation5], 4294963200 }
 0x2ae   :  { %925 = vsyncpa [#allocation3], 1 }
 0x2af   :  { %926 = vsyncpa [#allocation5], 1 }

</bundles_post_ra>
